<compile_context>
chip_gen: v5e
topology: v5e:2x2
jax: 0.10.0
libtpu: 0.0.40
codegen_flags: <defaults>
</compile_context>

<pallas_src>
import jax
import jax.numpy as jnp
from jax.experimental import pallas as pl
from jax.experimental.pallas import tpu as pltpu


def _round_up(x, m):
    return ((x + m - 1) // m) * m


def _make_kernel(use_vpu_first_layer, in_size):
    """Builds the fused Linear(in,H) -> ReLU -> Linear(H,out) kernel body."""

    def kernel(x_ref, w1_ref, b1_ref, w2_ref, b2_ref, o_ref):
        x = x_ref[...]                                    # (TB, in)
        w1 = w1_ref[...]                                  # (in, H)
        if use_vpu_first_layer:
            # Tiny contraction (K = in_size): a K-wide MXU pass would run at a
            # few-percent utilization, so do K unrolled broadcast FMAs on the
            # otherwise-idle VPU; they overlap with the second matmul's MXU work.
            h = x[:, 0:1] * w1[0:1, :]
            for k in range(1, in_size):
                h = h + x[:, k:k + 1] * w1[k:k + 1, :]
            h = h + b1_ref[...]
        else:
            h = jnp.dot(x.astype(w1.dtype), w1,
                        preferred_element_type=jnp.float32) + b1_ref[...]
        h = jnp.maximum(h, 0.0)                           # ReLU, f32 on the VPU
        # Second layer on the MXU: bf16 operands, f32 accumulation.
        y = jnp.dot(h.astype(w2_ref.dtype), w2_ref[...],
                    preferred_element_type=jnp.float32)
        o_ref[...] = (y + b2_ref[...]).astype(o_ref.dtype)

    return kernel


def prepare_params(w1, b1, w2, b2, *, mxu_dtype=jnp.bfloat16,
                   vpu_first_layer_max_k=16):
    """One-time canonicalization of PyTorch-layout params.

    w1: (hidden, in)  -> W1^T (in, hidden)   (f32 if the VPU path is used)
    b1: (hidden,)     -> (1, hidden) f32
    w2: (out, hidden) -> W2^T (hidden, out)  in bf16 for the MXU
    b2: (out,)        -> (1, out) f32
    """
    hidden, in_size = w1.shape
    out = w2.shape[0]
    use_vpu_first_layer = in_size <= vpu_first_layer_max_k

    w1_t = jnp.transpose(w1).astype(
        jnp.float32 if use_vpu_first_layer else mxu_dtype)    # (in, hidden)
    b1_2d = b1.reshape(1, hidden).astype(jnp.float32)         # (1, hidden)
    w2_t = jnp.transpose(w2).astype(mxu_dtype)                # (hidden, out)
    b2_2d = b2.reshape(1, out).astype(jnp.float32)            # (1, out)
    return (w1_t, b1_2d, w2_t, b2_2d, use_vpu_first_layer)


def network_forward(x, params, *, max_batch_tile=1024):
    """Pallas forward pass: relu(x @ W1^T + b1) @ W2^T + b2.

    x      : (B, input_size) float32
    params : output of prepare_params()
    returns: (B, out) float32
    """
    w1_t, b1_2d, w2_t, b2_2d, use_vpu_first_layer = params
    in_size, hidden = w1_t.shape
    out = w2_t.shape[1]
    B = x.shape[0]
    assert x.shape[1] == in_size

    # TODO(synk): for tiny B (single RL env step) a plain jnp expression beats
    # pallas_call launch overhead; the Pallas path is always taken here so the
    # kernel is exercised.

    # Batch tile: multiple of 8 (f32 sublane), large enough to amortize the
    # ~0.35 us/step grid overhead, but capped so moderate batches still yield
    # >=2 "parallel" tiles for v7x's two TensorCores (harmless on v5e/v6e).
    TB = max(8, min(max_batch_tile, _round_up(pl.cdiv(B, 2), 8)))
    grid = (pl.cdiv(B, TB),)   # ragged last block: OOB writes are masked,
                               # rows are independent so garbage reads are safe.

    kernel = _make_kernel(use_vpu_first_layer, in_size)

    return pl.pallas_call(
        kernel,
        out_shape=jax.ShapeDtypeStruct((B, out), jnp.float32),
        grid=grid,
        in_specs=[
            # x tiled over batch; weights/biases resident across all tiles.
            pl.BlockSpec((TB, in_size), lambda i: (i, 0)),
            pl.BlockSpec((in_size, hidden), lambda i: (0, 0)),
            pl.BlockSpec((1, hidden), lambda i: (0, 0)),
            pl.BlockSpec((hidden, out), lambda i: (0, 0)),
            pl.BlockSpec((1, out), lambda i: (0, 0)),
        ],
        out_specs=pl.BlockSpec((TB, out), lambda i: (i, 0)),
        compiler_params=pltpu.CompilerParams(
            dimension_semantics=("parallel",)),   # batch tiles across TCs on v7x
    )(x, w1_t, b1_2d, w2_t, b2_2d)


def init_params(key, input_size, output_size, hidden_size=128):
    """Matches the module's __init__: weights ~ N(0, 0.3); biases use
    PyTorch's default U(-1/sqrt(fan_in), 1/sqrt(fan_in))."""
    k1, k2, k3, k4 = jax.random.split(key, 4)
    w1 = 0.3 * jax.random.normal(k1, (hidden_size, input_size), jnp.float32)
    w2 = 0.3 * jax.random.normal(k2, (output_size, hidden_size), jnp.float32)
    bound1 = 1.0 / jnp.sqrt(jnp.float32(input_size))
    bound2 = 1.0 / jnp.sqrt(jnp.float32(hidden_size))
    b1 = jax.random.uniform(k3, (hidden_size,), jnp.float32, -bound1, bound1)
    b2 = jax.random.uniform(k4, (output_size,), jnp.float32, -bound2, bound2)
    return w1, b1, w2, b2


if __name__ == "__main__":
    key = jax.random.PRNGKey(0)
    kx, kp = jax.random.split(key)

    batch = 8
    input_size = 4      # e.g. CartPole observation dim
    output_size = 2     # e.g. CartPole action dim
    hidden_size = 128

    x = jax.random.normal(kx, (batch, input_size), jnp.float32)
    w1, b1, w2, b2 = init_params(kp, input_size, output_size, hidden_size)

    # One-time param canonicalization (hoisted out of the forward path).
    params = prepare_params(w1, b1, w2, b2)

    out = network_forward(x, params)
    out = jax.block_until_ready(out)

    # Reference check in plain f32 JAX (same math as the PyTorch forward).
    ref = jnp.maximum(x @ w1.T + b1, 0.0) @ w2.T + b2
    assert out.shape == (batch, output_size)
    # The second matmul runs with bf16 operands (f32 accumulation) on the MXU,
    # so tolerance is set for bf16-level (~1e-3 relative) error.
    assert jnp.allclose(out, ref, atol=5e-2, rtol=5e-2)

    print("KERNEL_OK")
</pallas_src>

<mosaic_0001>
module attributes {stable_mosaic.version = 11 : i64} {
  func.func @kernel(%arg0: i32, %arg1: memref<8x4xf32, #tpu.memory_space<vmem>>, %arg2: memref<4x128xf32, #tpu.memory_space<vmem>>, %arg3: memref<1x128xf32, #tpu.memory_space<vmem>>, %arg4: memref<128x2xbf16, #tpu.memory_space<vmem>>, %arg5: memref<1x2xf32, #tpu.memory_space<vmem>>, %arg6: memref<8x2xf32, #tpu.memory_space<vmem>>) attributes {dimension_semantics = [#tpu.dimension_semantics<parallel>], iteration_bounds = array<i64: 1>, scalar_prefetch = 0 : i64, scratch_operands = 0 : i64, tpu.core_type = #tpu.core_type<tc>, window_params = [{transform_indices = @transform_0, window_bounds = array<i64: 8, 4>}, {pipeline_mode = #tpu.pipeline_mode<synchronous>, transform_indices = @transform_1, window_bounds = array<i64: 4, 128>}, {pipeline_mode = #tpu.pipeline_mode<synchronous>, transform_indices = @transform_2, window_bounds = array<i64: 1, 128>}, {pipeline_mode = #tpu.pipeline_mode<synchronous>, transform_indices = @transform_3, window_bounds = array<i64: 128, 2>}, {pipeline_mode = #tpu.pipeline_mode<synchronous>, transform_indices = @transform_4, window_bounds = array<i64: 1, 2>}, {transform_indices = @transform_5, window_bounds = array<i64: 8, 2>}]} {
    %c0 = arith.constant 0 : index
    %c0_0 = arith.constant 0 : index
    %0 = vector.load %arg1[%c0, %c0_0] : memref<8x4xf32, #tpu.memory_space<vmem>>, vector<8x4xf32>
    %c0_1 = arith.constant 0 : index
    %c0_2 = arith.constant 0 : index
    %1 = vector.load %arg2[%c0_1, %c0_2] : memref<4x128xf32, #tpu.memory_space<vmem>>, vector<4x128xf32>
    %2 = vector.extract_strided_slice %0 {offsets = [0, 0], sizes = [8, 1], strides = [1, 1]} : vector<8x4xf32> to vector<8x1xf32>
    %3 = vector.extract_strided_slice %1 {offsets = [0, 0], sizes = [1, 128], strides = [1, 1]} : vector<4x128xf32> to vector<1x128xf32>
    %4 = vector.broadcast %2 : vector<8x1xf32> to vector<8x128xf32>
    %5 = vector.broadcast %3 : vector<1x128xf32> to vector<8x128xf32>
    %6 = arith.mulf %4, %5 : vector<8x128xf32>
    %7 = vector.extract_strided_slice %0 {offsets = [0, 1], sizes = [8, 1], strides = [1, 1]} : vector<8x4xf32> to vector<8x1xf32>
    %8 = vector.extract_strided_slice %1 {offsets = [1, 0], sizes = [1, 128], strides = [1, 1]} : vector<4x128xf32> to vector<1x128xf32>
    %9 = vector.broadcast %7 : vector<8x1xf32> to vector<8x128xf32>
    %10 = vector.broadcast %8 : vector<1x128xf32> to vector<8x128xf32>
    %11 = arith.mulf %9, %10 : vector<8x128xf32>
    %12 = arith.addf %6, %11 : vector<8x128xf32>
    %13 = vector.extract_strided_slice %0 {offsets = [0, 2], sizes = [8, 1], strides = [1, 1]} : vector<8x4xf32> to vector<8x1xf32>
    %14 = vector.extract_strided_slice %1 {offsets = [2, 0], sizes = [1, 128], strides = [1, 1]} : vector<4x128xf32> to vector<1x128xf32>
    %15 = vector.broadcast %13 : vector<8x1xf32> to vector<8x128xf32>
    %16 = vector.broadcast %14 : vector<1x128xf32> to vector<8x128xf32>
    %17 = arith.mulf %15, %16 : vector<8x128xf32>
    %18 = arith.addf %12, %17 : vector<8x128xf32>
    %19 = vector.extract_strided_slice %0 {offsets = [0, 3], sizes = [8, 1], strides = [1, 1]} : vector<8x4xf32> to vector<8x1xf32>
    %20 = vector.extract_strided_slice %1 {offsets = [3, 0], sizes = [1, 128], strides = [1, 1]} : vector<4x128xf32> to vector<1x128xf32>
    %21 = vector.broadcast %19 : vector<8x1xf32> to vector<8x128xf32>
    %22 = vector.broadcast %20 : vector<1x128xf32> to vector<8x128xf32>
    %23 = arith.mulf %21, %22 : vector<8x128xf32>
    %24 = arith.addf %18, %23 : vector<8x128xf32>
    %c0_3 = arith.constant 0 : index
    %c0_4 = arith.constant 0 : index
    %25 = vector.load %arg3[%c0_3, %c0_4] : memref<1x128xf32, #tpu.memory_space<vmem>>, vector<1x128xf32>
    %26 = vector.broadcast %25 : vector<1x128xf32> to vector<8x128xf32>
    %27 = arith.addf %24, %26 : vector<8x128xf32>
    %cst = arith.constant 0.000000e+00 : f32
    %28 = vector.broadcast %cst : f32 to vector<8x128xf32>
    %29 = arith.maximumf %27, %28 : vector<8x128xf32>
    %30 = arith.truncf %29 : vector<8x128xf32> to vector<8x128xbf16>
    %c0_5 = arith.constant 0 : index
    %c0_6 = arith.constant 0 : index
    %31 = vector.load %arg4[%c0_5, %c0_6] : memref<128x2xbf16, #tpu.memory_space<vmem>>, vector<128x2xbf16>
    %cst_7 = arith.constant dense<0.000000e+00> : vector<8x2xf32>
    %32 = tpu.matmul %30, %31, %cst_7 {dimension_numbers = #tpu.dot_dimension_numbers<[1], [0], [0], [1], [0, 0, 1, 1], [], []>} : vector<8x128xbf16>, vector<128x2xbf16>, vector<8x2xf32> -> vector<8x2xf32>
    %c0_8 = arith.constant 0 : index
    %c0_9 = arith.constant 0 : index
    %33 = vector.load %arg5[%c0_8, %c0_9] : memref<1x2xf32, #tpu.memory_space<vmem>>, vector<1x2xf32>
    %34 = vector.broadcast %33 : vector<1x2xf32> to vector<8x2xf32>
    %35 = arith.addf %32, %34 : vector<8x2xf32>
    %c0_10 = arith.constant 0 : index
    %c0_11 = arith.constant 0 : index
    %36 = vector.load %arg6[%c0_10, %c0_11] : memref<8x2xf32, #tpu.memory_space<vmem>>, vector<8x2xf32>
    tpu.vector_store %arg6[%c0_10, %c0_11], %35 {strides = array<i32>} : memref<8x2xf32, #tpu.memory_space<vmem>>, vector<8x2xf32>,
    return
  }
  func.func @transform_0(%arg0: i32) -> (i32, i32) {
    %c0_i32 = arith.constant 0 : i32
    %c0_i32_0 = arith.constant 0 : i32
    return %arg0, %c0_i32 : i32, i32
  }
  func.func @transform_1(%arg0: i32) -> (i32, i32) {
    %c0_i32 = arith.constant 0 : i32
    %c0_i32_0 = arith.constant 0 : i32
    %c0_i32_1 = arith.constant 0 : i32
    return %c0_i32, %c0_i32_0 : i32, i32
  }
  func.func @transform_2(%arg0: i32) -> (i32, i32) {
    %c0_i32 = arith.constant 0 : i32
    %c0_i32_0 = arith.constant 0 : i32
    %c0_i32_1 = arith.constant 0 : i32
    return %c0_i32, %c0_i32_0 : i32, i32
  }
  func.func @transform_3(%arg0: i32) -> (i32, i32) {
    %c0_i32 = arith.constant 0 : i32
    %c0_i32_0 = arith.constant 0 : i32
    %c0_i32_1 = arith.constant 0 : i32
    return %c0_i32, %c0_i32_0 : i32, i32
  }
  func.func @transform_4(%arg0: i32) -> (i32, i32) {
    %c0_i32 = arith.constant 0 : i32
    %c0_i32_0 = arith.constant 0 : i32
    %c0_i32_1 = arith.constant 0 : i32
    return %c0_i32, %c0_i32_0 : i32, i32
  }
  func.func @transform_5(%arg0: i32) -> (i32, i32) {
    %c0_i32 = arith.constant 0 : i32
    %c0_i32_0 = arith.constant 0 : i32
    return %arg0, %c0_i32 : i32, i32
  }
}

</mosaic_0001>

<bundles_post_ra>
// kernel: tpu_custom_call.1
= control target key start
LH: loop header
LB: loop body
LE: loop exit
PB: predicated region body
PF: predicated region fallthrough
CT: control target
= control target key end

     0   :  { %v195_v0 = vmov 0   ;;  %v196_v2 = vmov 2   ;;  %v197_v5 = vmov 1   ;;  %v198_v6 = vmov 3   ;;  %s268_s0 = inlined_call_operand.vmem [shape: f32[8,4], index: 0, kind: input, shape index: {}]   ;;  %s269_s3 = inlined_call_operand.vmem [shape: bf16[128,2], index: 3, kind: input, shape index: {}]   ;;  %s270_s2 = inlined_call_operand.vmem [shape: f32[1,128], index: 2, kind: input, shape index: {}]   ;;  %s271_s4 = inlined_call_operand.vmem [shape: f32[1,2], index: 4, kind: input, shape index: {}]   ;;  %s272_s1 = inlined_call_operand.vmem [shape: f32[4,128], index: 1, kind: input, shape index: {}]   ;;  %s273_s5 = inlined_call_operand.vmem [shape: f32[8,2], index: 5, kind: output, shape index: {}]  }
   0x1   :  { %188 = vset.pattern.permute.xlu0 %v195_v0  ;;  %v20_v1 = vld [vmem:[%s268_s0] sm:$0xff]  ;;  %190 = vset.pattern.permute.xlu1 %v196_v2  ;;  %v183_v3 = vld [vmem:[%s269_s3 + $0x38] sm:$0xff]  ;;  %v182_v4 = vld [vmem:[%s269_s3 + $0x30] sm:$0xff]  ;;  %vm138_vm0 = vcmask 15360  }
   0x2   :  { %24 = vperm.xlu0 %188, %v20_v1   ;;  %37 = vperm.xlu1 %190, %v20_v1   ;;  %v181_v7 = vld [vmem:[%s269_s3 + $0x28] sm:$0xff]  ;;  %v180_v8 = vld [vmem:[%s269_s3 + $0x20] sm:$0xff]  ;;  %v179_v9 = vld [vmem:[%s269_s3 + $0x18] sm:$0xff] }
   0x3   :  { %125 = vmatpush.bf16.msra.mxu0 %v183_v3  ;;  %v178_v10 = vld [vmem:[%s269_s3 + $0x10] sm:$0xff]  ;;  %v177_v11 = vld [vmem:[%s269_s3 + $0x8] sm:$0xff]  ;;  %v176_v12 = vld [vmem:[%s269_s3] sm:$0xff] }
   0x4   :  { %v21_v15 = vld [vmem:[%s272_s1] sm:$0xf] }
   0x5   :  { %v27_v16 = vperm.slane %v21_v15, 0  ;;  %v33_v17 = vperm.slane %v21_v15, 1  ;;  %v40_v18 = vperm.slane %v21_v15, 2  ;;  %v47_v19 = vperm.slane %v21_v15, 3  ;;  %v193_v28 = vld [vmem:[%s270_s2] ss:$0 sm:$0xff] }
   0x6   :  { %v194_v33 = vld [vmem:[%s271_s4] ss:$0 sm:$0xff] }
   0x7   :  { %126 = vmatpush.bf16.msra.mxu0 %v182_v4 }
   0xa   :  { %189 = vset.pattern.permute.xlu0 %v197_v5  ;;  %191 = vset.pattern.permute.xlu1 %v198_v6 }
   0xb   :  { %30 = vperm.xlu0 %189, %v20_v1   ;;  %44 = vperm.xlu1 %191, %v20_v1  }
   0xc   :  { %127 = vmatpush.bf16.msra.mxu0 %v181_v7 }
  0x10   :  { %128 = vmatpush.bf16.msra.mxu0 %v180_v8 }
  0x13   :  { %192 = vset.pattern.permute.xlu0 %v198_v6 }
  0x14   :  { %129 = vmatpush.bf16.msra.mxu0 %v179_v9 }
  0x18   :  { %130 = vmatpush.bf16.msra.mxu0 %v178_v10 }
  0x1c   :  { %131 = vmatpush.bf16.msra.mxu0 %v177_v11 }
  0x20   :  { %132 = vmatpush.bf16.msra.mxu0 %v176_v12 }
  0x74   :  { %v25_v13 = vpop.permute.xlu0 %24  ;;  %v38_v14 = vpop.permute.xlu1 %37 }
  0x75   :  { %v28_v22 = vmul.f32 %v27_v16, %v25_v13  ;;  %v41_v24 = vmul.f32 %v40_v18, %v38_v14 }
  0x7d   :  { %v31_v20 = vpop.permute.xlu0 %30  ;;  %v45_v21 = vpop.permute.xlu1 %44 }
  0x7e   :  { %v34_v23 = vmul.f32 %v33_v17, %v31_v20  ;;  %v48_v26 = vmul.f32 %v47_v19, %v45_v21 }
  0x80   :  { %v35_v25 = vadd.f32 %v34_v23, %v28_v22 }
  0x82   :  { %v42_v27 = vadd.f32 %v41_v24, %v35_v25 }
  0x84   :  { %v49_v29 = vadd.f32 %v48_v26, %v42_v27 }
  0x86   :  { %v54_v30 = vadd.f32 %v193_v28, %v49_v29 }
  0x88   :  { %v55_v31 = vmax.f32 %v54_v30, 0.0 }
  0x8a   :  { %v56_v32 = vpack.c.bf16 %v55_v31, %v55_v31 }
  0x8c   :  { %133 = vmatmul.bf16.vlgmr.msra.gmra.mxu0 %v56_v32 }
 0x109   :  { %v134_v34 = vpop.f32.mrf.mxu0 }
 0x10a   :  { %v135_v35 = vadd.f32 %v194_v33, %v134_v34 }
 0x10c   :  { %139 = vst.msk [vmem:[%s273_s5] sm:$0xff] %vm138_vm0, %v135_v35 }
 0x111   :  { %v136_v36 = vpop.f32.mrf.mxu0 }

</bundles_post_ra>
